<compile_context>
chip_gen: v6e
topology: v6e:2x2x1
jax: 0.10.0
libtpu: 0.0.40
codegen_flags: <defaults>
</compile_context>

<pallas_src>
import warnings

import numpy as np
import jax
import jax.numpy as jnp
from jax import lax
from jax.experimental import pallas as pl
from jax.experimental.pallas import tpu as pltpu


# ----------------------------------------------------------------------------
# Config helpers
# ----------------------------------------------------------------------------
def _threshold(threshold, pade_order, strict):
    if threshold is not None:
        return float(threshold)
    table = {4: (4.5, 6.2), 5: (6.0, 7.65), 6: (7.4, 9.13), 7: (8.9, 10.6)}
    if pade_order not in table:
        raise ValueError("Unexpected Pade order.")
    return table[pade_order][0 if strict else 1]


def _precompute_weights(cep_order, alpha):
    # Double-precision precompute (matches diffsptk), cast to f32 for the kernel.
    av = np.power(-float(alpha), np.arange(cep_order + 1, dtype=np.float64))
    wv = 1.0 - av  # wv[0] == 0  =>  sum(c*wv) == sum(c) - gain (fused reduction)
    return np.stack([av, wv], axis=1).astype(np.float32)      # (M+1, 2)


def _round_up(x, m):
    return ((x + m - 1) // m) * m


def _num_tensorcores():
    # v7x has 2 TensorCores per chip (megacore); v5e/v6e have 1.
    try:
        kind = jax.devices()[0].device_kind.lower()
    except Exception:
        return 1
    return 2 if "v7" in kind else 1


def _choose_tile(n_cols, m1, emit_amp, vmem_budget_bytes, max_tile):
    """Largest lane-tile that keeps the double-buffered footprint in budget."""
    # Conservative per-lane buffered bytes: sublane-padded input + output
    # blocks (+ amp row), each double-buffered.
    row_bytes = _round_up(m1, 8) * 4
    per_lane = 2 * (2 * row_bytes + (4 if emit_amp else 0))
    tile = max(128, (vmem_budget_bytes // per_lane) // 128 * 128)
    tile = min(tile, max_tile, _round_up(max(n_cols, 1), 128))
    # Megacore sharding (v7x only): prefer >= 2*num_TC blocks so both cores
    # stay busy.  On single-TC parts splitting only doubles per-step overhead.
    min_blocks = 2 * _num_tensorcores()
    if min_blocks > 1 and n_cols >= min_blocks * 128:
        tile = min(tile, max(128, _round_up(-(-n_cols // min_blocks), 128)))
    return tile


# ----------------------------------------------------------------------------
# Kernel
# ----------------------------------------------------------------------------
def _make_kernel(threshold, emit_amp):
    thr = float(threshold)

    def kernel(c_ref, aw_ref, o_ref, *rest):
        # c: (M+1, T) lane-dense tile; accumulate in f32 (bf16-safe).
        c = c_ref[...].astype(jnp.float32)
        av = aw_ref[:, 0:1]                                    # (M+1, 1): (-alpha)**k
        wv = aw_ref[:, 1:2]                                    # (M+1, 1): 1-(-alpha)**k
        gain = jnp.sum(c * av, axis=0, keepdims=True)                      # (1, T)
        max_amp = jnp.maximum(jnp.sum(c * wv, axis=0, keepdims=True), 1e-16)
        scale = jnp.minimum(thr / max_amp, 1.0)                            # (1, T)
        # Base: out = c*scale for all rows; then overwrite row 0 only
        # (out0 = (c0 - gain)*scale + gain) — avoids a full-block iota/select.
        o_ref[...] = (c * scale).astype(o_ref.dtype)
        o_ref[0:1, :] = ((c[0:1, :] - gain) * scale + gain).astype(o_ref.dtype)
        if emit_amp:
            rest[0][...] = max_amp                              # per-frame amplitude

    return kernel


# ----------------------------------------------------------------------------
# Wrapper
# ----------------------------------------------------------------------------
def mlsa_check(c, *, cep_order, alpha=0.0, pade_order=4, strict=True,
               threshold=None, warn_type="warn",
               max_tile_cols=32768, vmem_budget_bytes=10 << 20):
    """Fast-mode MLSA stability check (mod_type='scale')."""
    assert c.shape[-1] == cep_order + 1, "dimension of mel-cepstrum mismatch"
    assert warn_type in ("ignore", "warn", "exit")
    thr = _threshold(threshold, pade_order, strict)
    m1 = cep_order + 1

    aw_in = jnp.asarray(_precompute_weights(cep_order, alpha))   # (m1, 2) f32

    orig_shape = c.shape
    # Lane-dense layout: flattened batch/frame axis on lanes, M+1 on sublanes.
    # (Wrapper-side transpose is layout plumbing; the kernel reads/writes HBM
    # exactly once in a fully lane-dense shape.)
    ct = c.reshape(-1, m1).T                                     # (m1, n_cols)
    n_cols = ct.shape[1]

    emit_amp = warn_type != "ignore"

    tile = _choose_tile(n_cols, m1, emit_amp, vmem_budget_bytes, max_tile_cols)
    grid = (pl.cdiv(n_cols, tile),)                              # ragged last block

    data_spec = pl.BlockSpec((m1, tile), lambda i: (0, i))
    const_spec = pl.BlockSpec((m1, 2), lambda i: (0, 0))         # DMA'd once

    if emit_amp:
        out_shape = (jax.ShapeDtypeStruct((m1, n_cols), c.dtype),
                     jax.ShapeDtypeStruct((1, n_cols), jnp.float32))
        out_specs = (pl.BlockSpec((m1, tile), lambda i: (0, i)),
                     pl.BlockSpec((1, tile), lambda i: (0, i)))
    else:
        out_shape = jax.ShapeDtypeStruct((m1, n_cols), c.dtype)
        out_specs = pl.BlockSpec((m1, tile), lambda i: (0, i))

    in_bytes = jnp.dtype(c.dtype).itemsize
    cost = pl.CostEstimate(
        flops=5 * m1 * n_cols,
        transcendentals=0,
        bytes_accessed=(m1 * n_cols * 2 * in_bytes
                        + (4 * n_cols if emit_amp else 0) + m1 * 2 * 4))

    res = pl.pallas_call(
        _make_kernel(thr, emit_amp),
        out_shape=out_shape,
        grid_spec=pltpu.PrefetchScalarGridSpec(
            num_scalar_prefetch=0,
            grid=grid,
            in_specs=[data_spec, const_spec],
            out_specs=out_specs,
        ),
        compiler_params=pltpu.CompilerParams(
            dimension_semantics=("parallel",)),
        cost_estimate=cost,
    )(ct, aw_in)

    if emit_amp:
        out_t, amp = res
    else:
        out_t = res

    out = out_t.T.reshape(orig_shape)

    if emit_amp:
        # Stability flag comes straight from the kernel (no second HBM pass);
        # the device->host sync only happens on this opt-in warn/exit path.
        # NOTE: this forces concretization, so warn/exit mode is not jit-able
        # (matching the eager torch semantics of warning/raising).
        unstable = bool(jnp.max(amp) > thr)
        if unstable:
            if warn_type == "warn":
                warnings.warn("Detected unstable MLSA filter.")
            else:  # "exit"
                raise RuntimeError("Detected unstable MLSA filter.")
    return out


# TODO(synk): non-fast mode (rfft/irfft over n_fft bins) has no clean in-kernel
# Pallas FFT primitive; only the default fast mode is implemented here.


# ----------------------------------------------------------------------------
# Plain-JAX reference (torch semantics) for sanity checking.
# ----------------------------------------------------------------------------
def _reference(c, cep_order, alpha, threshold):
    av = jnp.asarray(
        np.power(-float(alpha), np.arange(cep_order + 1, dtype=np.float64)
                 ).astype(np.float32))
    gain = jnp.sum(c * av, axis=-1, keepdims=True)
    max_amp = jnp.maximum(jnp.sum(c, axis=-1, keepdims=True) - gain, 1e-16)
    scale = jnp.minimum(threshold / max_amp, 1.0)
    c0 = (c[..., :1] - gain) * scale + gain
    c1 = c[..., 1:] * scale
    return jnp.concatenate([c0, c1], axis=-1)


if __name__ == "__main__":
    cep_order = 4            # M = 4  ->  last dim = 5
    alpha = 0.42

    # --- small case (module example scale), warn_type='ignore' -------------
    key = jax.random.PRNGKey(0)
    c = 10.0 * jax.random.normal(key, (2, 8, cep_order + 1), dtype=jnp.float32)
    out = mlsa_check(c, cep_order=cep_order, alpha=alpha,
                     pade_order=4, strict=True, warn_type="ignore")
    out = jax.block_until_ready(out)
    ref = _reference(c, cep_order, alpha, 4.5)
    assert out.shape == c.shape
    assert jnp.allclose(out, ref, rtol=1e-4, atol=1e-4), "f32 mismatch vs reference"

    # --- moderate case: ragged last block, bf16 input, warn path -----------
    key2 = jax.random.PRNGKey(1)
    c2 = (10.0 * jax.random.normal(key2, (4, 300, cep_order + 1),
                                   dtype=jnp.float32)).astype(jnp.bfloat16)
    with warnings.catch_warnings():
        warnings.simplefilter("ignore")
        out2 = mlsa_check(c2, cep_order=cep_order, alpha=alpha,
                          pade_order=4, strict=True, warn_type="warn")
    out2 = jax.block_until_ready(out2)
    ref2 = _reference(c2.astype(jnp.float32), cep_order, alpha, 4.5)
    assert out2.shape == c2.shape
    assert jnp.allclose(out2.astype(jnp.float32), ref2, rtol=2e-2, atol=2e-2), \
        "bf16 mismatch vs reference"

    print("KERNEL_OK")
</pallas_src>

<mosaic_0001>
module attributes {stable_mosaic.version = 11 : i64} {
  func.func @kernel(%arg0: i32, %arg1: memref<5x128xf32, #tpu.memory_space<vmem>>, %arg2: memref<5x2xf32, #tpu.memory_space<vmem>>, %arg3: memref<5x128xf32, #tpu.memory_space<vmem>>) attributes {dimension_semantics = [#tpu.dimension_semantics<parallel>], iteration_bounds = array<i64: 1>, scalar_prefetch = 0 : i64, scratch_operands = 0 : i64, tpu.core_type = #tpu.core_type<tc>, window_params = [{transform_indices = @transform_0, window_bounds = array<i64: 5, 128>}, {pipeline_mode = #tpu.pipeline_mode<synchronous>, transform_indices = @transform_1, window_bounds = array<i64: 5, 2>}, {transform_indices = @transform_2, window_bounds = array<i64: 5, 128>}]} {
    %c0 = arith.constant 0 : index
    %c0_0 = arith.constant 0 : index
    %0 = vector.load %arg1[%c0, %c0_0] : memref<5x128xf32, #tpu.memory_space<vmem>>, vector<5x128xf32>
    %c0_1 = arith.constant 0 : index
    %c0_2 = arith.constant 0 : index
    %1 = vector.load %arg2[%c0_1, %c0_2] : memref<5x2xf32, #tpu.memory_space<vmem>>, vector<5x1xf32>
    %c0_3 = arith.constant 0 : index
    %c1 = arith.constant 1 : index
    %2 = vector.load %arg2[%c0_3, %c1] : memref<5x2xf32, #tpu.memory_space<vmem>>, vector<5x1xf32>
    %3 = vector.broadcast %1 : vector<5x1xf32> to vector<5x128xf32>
    %4 = arith.mulf %0, %3 : vector<5x128xf32>
    %cst = arith.constant dense<0.000000e+00> : vector<128xf32>
    %5 = vector.multi_reduction <add>, %4, %cst [0] : vector<5x128xf32> to vector<128xf32>
    %6 = vector.shape_cast %5 : vector<128xf32> to vector<1x128xf32>
    %7 = vector.broadcast %2 : vector<5x1xf32> to vector<5x128xf32>
    %8 = arith.mulf %0, %7 : vector<5x128xf32>
    %cst_4 = arith.constant dense<0.000000e+00> : vector<128xf32>
    %9 = vector.multi_reduction <add>, %8, %cst_4 [0] : vector<5x128xf32> to vector<128xf32>
    %10 = vector.shape_cast %9 : vector<128xf32> to vector<1x128xf32>
    %cst_5 = arith.constant 1.000000e-16 : f32
    %11 = vector.broadcast %cst_5 : f32 to vector<1x128xf32>
    %12 = arith.maximumf %10, %11 : vector<1x128xf32>
    %cst_6 = arith.constant 4.500000e+00 : f32
    %13 = vector.broadcast %cst_6 : f32 to vector<1x128xf32>
    %14 = arith.divf %13, %12 : vector<1x128xf32>
    %cst_7 = arith.constant 1.000000e+00 : f32
    %15 = vector.broadcast %cst_7 : f32 to vector<1x128xf32>
    %16 = arith.minimumf %14, %15 : vector<1x128xf32>
    %17 = vector.broadcast %16 : vector<1x128xf32> to vector<5x128xf32>
    %18 = arith.mulf %0, %17 : vector<5x128xf32>
    %c0_8 = arith.constant 0 : index
    %c0_9 = arith.constant 0 : index
    %19 = vector.load %arg3[%c0_8, %c0_9] : memref<5x128xf32, #tpu.memory_space<vmem>>, vector<5x128xf32>
    tpu.vector_store %arg3[%c0_8, %c0_9], %18 {strides = array<i32>} : memref<5x128xf32, #tpu.memory_space<vmem>>, vector<5x128xf32>,
    %20 = vector.extract_strided_slice %0 {offsets = [0, 0], sizes = [1, 128], strides = [1, 1]} : vector<5x128xf32> to vector<1x128xf32>
    %21 = arith.subf %20, %6 : vector<1x128xf32>
    %22 = arith.mulf %21, %16 : vector<1x128xf32>
    %23 = arith.addf %22, %6 : vector<1x128xf32>
    %c0_10 = arith.constant 0 : index
    %c0_11 = arith.constant 0 : index
    %24 = vector.load %arg3[%c0_10, %c0_11] : memref<5x128xf32, #tpu.memory_space<vmem>>, vector<1x128xf32>
    tpu.vector_store %arg3[%c0_10, %c0_11], %23 {strides = array<i32>} : memref<5x128xf32, #tpu.memory_space<vmem>>, vector<1x128xf32>,
    return
  }
  func.func @transform_0(%arg0: i32) -> (i32, i32) {
    %c0_i32 = arith.constant 0 : i32
    %c0_i32_0 = arith.constant 0 : i32
    return %c0_i32, %arg0 : i32, i32
  }
  func.func @transform_1(%arg0: i32) -> (i32, i32) {
    %c0_i32 = arith.constant 0 : i32
    %c0_i32_0 = arith.constant 0 : i32
    %c0_i32_1 = arith.constant 0 : i32
    return %c0_i32, %c0_i32_0 : i32, i32
  }
  func.func @transform_2(%arg0: i32) -> (i32, i32) {
    %c0_i32 = arith.constant 0 : i32
    %c0_i32_0 = arith.constant 0 : i32
    return %c0_i32, %arg0 : i32, i32
  }
}

</mosaic_0001>

<bundles_post_ra>
// kernel: tpu_custom_call.1
= control target key start
LH: loop header
LB: loop body
LE: loop exit
PB: predicated region body
PF: predicated region fallthrough
CT: control target
= control target key end

     0   :  { %v94_v1 = vmov 1   ;;  %s121_s0 = inlined_call_operand.vmem [shape: f32[5,16], index: 0, kind: input, shape index: {}]   ;;  %s122_s1 = inlined_call_operand.vmem [shape: f32[5,2], index: 1, kind: input, shape index: {}]   ;;  %s123_s2 = inlined_call_operand.hbm [shape: f32[5,16], index: 2, kind: output, shape index: {}]  }
   0x1   :  { %v13_v0 = vld [vmem:[%s122_s1] sm:$0x1f]  ;;  %67 = vset.pattern.permute.xlu0 %v94_v1 }
   0x2   :  { %7 = vsyncpa [#allocation3], 0  ;;  %29 = vperm.xlu0 %67, %v13_v0   ;;  %v95_v2 = vmov 0   ;;  %v12_v3 = vld [vmem:[%s121_s0] sm:$0x1f]  ;;  %vm20_vm0 = vcmask 1044480  }
   0x3   :  { %s96_s0 = smov [#allocation2]  }
   0x4   :  { %s56_s1 = sshll.u32 %s96_s0, 4  ;;  %s57_s1 = int_to_ptr.vmem [resolvable:$true] %s56_s1 }
   0x5   :  { %s72_s13 = scalar_lea.vmem %s57_s1, 128  ;;  %p77_p1 = scmp.lt.s32.totalorder %s57_s1, %s57_s1 }
   0x6   :  { %68 = vset.pattern.permute.xlu0 %v95_v2  ;;  %p73_p0 = scmp.ne.s32.totalorder %s57_s1, %s72_s13  ;;  %p78_p2 = scmp.lt.s32.totalorder %s72_s13, %s72_s13 }
   0x7   :  { %16 = vperm.xlu0 %68, %v13_v0  }
   0x8   :  { %p79_p3 = por %p78_p2, %p77_p1 }
   0xa   :  { %p80_p4 = pnand %p79_p3, %p73_p0 }
   0xb   :  { %69 = vset.pattern.permute.xlu0 %v94_v1 }
  0x7d   :  { %v30_v4 = vpop.permute.xlu0 %29 }
  0x7e   :  { %v32_v5 = vmul.f32 %v30_v4, %v12_v3 }
  0x80   :  { %v33_v6 = vsel %vm20_vm0, %v32_v5, 0.0 }
  0x81   :  { %v34_v7 = vrot.slane %v33_v6, 4 }
  0x82   :  { %v17_v8 = vpop.permute.xlu0 %16 }
  0x83   :  { %v35_v9 = vadd.f32 %v34_v7, %v33_v6  ;;  %v19_v10 = vmul.f32 %v17_v8, %v12_v3 }
  0x85   :  { %v36_v11 = vrot.slane %v35_v9, 2  ;;  %v21_v12 = vsel %vm20_vm0, %v19_v10, 0.0 }
  0x86   :  { %v22_v14 = vrot.slane %v21_v12, 4 }
  0x87   :  { %v37_v13 = vadd.f32 %v36_v11, %v35_v9 }
  0x88   :  { %v23_v17 = vadd.f32 %v22_v14, %v21_v12 }
  0x89   :  { %v38_v15 = vrot.slane %v37_v13, 1 }
  0x8a   :  { %v24_v19 = vrot.slane %v23_v17, 2 }
  0x8b   :  { %v39_v16 = vadd.f32 %v38_v15, %v37_v13 }
  0x8c   :  { %v25_v20 = vadd.f32 %v24_v19, %v23_v17 }
  0x8d   :  { %v40_v18 = vmax.f32 %v39_v16, 1e-16 }
  0x8e   :  { %v26_v21 = vrot.slane %v25_v20, 1 }
  0x8f   :  { %70 = vrcp.f32 %v40_v18 }
  0x90   :  { %v27_v22 = vadd.f32 %v26_v21, %v25_v20 }
  0x92   :  { %v46_v26 = vsub.f32 %v12_v3, %v27_v22 }
  0x9c   :  { %v71_v23 = vpop.eup %70 }
  0x9d   :  { %v42_v24 = vmul.f32 4.5, %v71_v23 }
  0x9f   :  { %v43_v25 = vmin.f32 %v42_v24, 1.0 }
  0xa1   :  { %v44_v27 = vmul.f32 %v43_v25, %v12_v3  ;;  %v47_v28 = vmul.f32 %v46_v26, %v43_v25 }
  0xa3   :  { %45 = vst [vmem:[#allocation2] sm:$0x1f] %v44_v27  ;;  %v48_v29 = vadd.f32 %v47_v28, %v27_v22 }
  0xa5   :  { %49 = vst [vmem:[#allocation2] sm:$0x1] %v48_v29 }
  0xa6   :  { %83 = shalt.err (!%p80_p4)
}
  0xa7   :  { %59 = dma.vmem_to_hbm [thread:$0]  %s57_s1, 128, %s123_s2, [#allocation3]  }
  0xa8   :  { %92 = dma.done.wait [#allocation3], 128  }
  0xa9   :  { %93 = vsyncadd [#allocation3], 4294967168 }
  0xaa   :  { %63 = vsyncpa [#allocation3], 1 }

</bundles_post_ra>
